<compile_context>
chip_gen: v7x
topology: tpu7x:2x2x1
jax: 0.10.0
libtpu: 0.0.40
codegen_flags: <defaults>
</compile_context>

<pallas_src>
import math
import functools

import jax
import jax.numpy as jnp
from jax import lax
from jax.experimental import pallas as pl
from jax.experimental.pallas import tpu as pltpu


# ---------------------------------------------------------------------------
# Single fused kernel: one grid step per batch element.
# ---------------------------------------------------------------------------
def fused_forward_kernel(x_ref, wc_ref, scale_ref, shift_ref,
                         wqkv_ref, bqkv_ref, w1_ref, b1_ref,
                         wf_ref, bf_ref,
                         logits_ref, p_ref,
                         s_scratch,
                         *, pool, n_heads, d_head):
    b = pl.program_id(0)

    # ---- layer1: Conv1d(bias=False) as one im2col matmul + BatchNorm1d(eval) + ReLU
    x = x_ref[0]                                            # (L_out, K*C_in)
    y = jnp.dot(x, wc_ref[...], preferred_element_type=jnp.float32)
    y = y * scale_ref[...] + shift_ref[...]                 # folded BN (eval)
    y = jnp.maximum(y, 0.0)                                 # ReLU

    # ---- MaxPool1d(pool, pool): single vectorized reduce
    l_out, f0 = y.shape
    t = l_out // pool
    pooled = jnp.max(y.reshape(t, pool, f0), axis=1)        # (T, F0)

    # ---- fused Q/K/V projection for all heads: one MXU matmul
    qkv = jnp.dot(pooled, wqkv_ref[...],
                  preferred_element_type=jnp.float32) + bqkv_ref[...]  # (T, 3*H*d)
    hd = n_heads * d_head
    inv_sqrt_dk = 1.0 / math.sqrt(d_head)

    # ---- per-head scaled-dot-product attention + ReLU, with MultiHeadLinear
    #      accumulated head-by-head (equivalent to concat-then-matmul).
    lin = w1_ref.shape[1]
    z = jnp.zeros((t, lin), jnp.float32)
    for h in range(n_heads):                                # static, tiny H
        q = qkv[:, h * d_head:(h + 1) * d_head]
        k = qkv[:, hd + h * d_head: hd + (h + 1) * d_head]
        v = qkv[:, 2 * hd + h * d_head: 2 * hd + (h + 1) * d_head]
        scores = lax.dot_general(q, k, (((1,), (1,)), ((), ())),
                                 preferred_element_type=jnp.float32) * inv_sqrt_dk
        scores = scores - jnp.max(scores, axis=-1, keepdims=True)
        e = jnp.exp(scores)
        p = e * pl.reciprocal(jnp.sum(e, axis=-1, keepdims=True), approx=True)
        p_ref[0, h * t:(h + 1) * t, :] = p                  # torch.cat(..., dim=1)
        attn = jnp.maximum(
            jnp.dot(p, v, preferred_element_type=jnp.float32), 0.0)  # RELU[i]
        # attn_concat @ W1 == sum_h attn_h @ W1[h*d:(h+1)*d]
        z = z + jnp.dot(attn, w1_ref[h * d_head:(h + 1) * d_head, :],
                        preferred_element_type=jnp.float32)
    z = jnp.maximum(z + b1_ref[...], 0.0)                   # MultiHeadLinear + MHReLU

    # ---- 'normalize' readout, step 1: per-sample sum over time
    s_scratch[pl.ds(b, 1), :] = jnp.sum(z, axis=0, keepdims=True)

    # ---- last batch element: global mean/std normalize (torch semantics) + fc3
    @pl.when(b == pl.num_programs(0) - 1)
    def _():
        s = s_scratch[...]                                  # (B, lin)
        n = s.shape[0] * s.shape[1]
        mean = jnp.sum(s) / n
        var = jnp.sum((s - mean) ** 2) / (n - 1)            # torch.std (unbiased)
        norm = (s - mean) * lax.rsqrt(var)
        logits_ref[...] = jnp.dot(norm, wf_ref[...],
                                  preferred_element_type=jnp.float32) + bf_ref[...]


# ---------------------------------------------------------------------------
# Wrapper: full AttentionNet.forward for the chosen configuration.
# ---------------------------------------------------------------------------
def attention_net_forward(x_ncl, params, *, pad, pool, n_heads, d_head):
    # x_ncl: (B, C_in, L) as the PyTorch module expects.
    B, c_in, seq_len = x_ncl.shape
    kc, f0 = params["conv_w"].shape                         # kc = ksize * c_in
    ksize = kc // c_in
    l_out = seq_len + 2 * pad - ksize + 1
    t = l_out // pool
    lin = params["w1"].shape[1]
    ncls = params["wf"].shape[1]
    hd = n_heads * d_head

    # NCL -> NLC, pad, im2col patch matrix (layout plumbing only; the conv
    # matmul itself happens on the MXU inside the kernel).
    x = jnp.transpose(x_ncl, (0, 2, 1))
    x_pad = jnp.pad(x, ((0, 0), (pad, pad), (0, 0)))
    win = jnp.arange(l_out)[:, None] + jnp.arange(ksize)[None, :]   # (L_out, K)
    x_patch = x_pad[:, win, :].reshape(B, l_out, kc)                # (B, L_out, K*C_in)

    kern = functools.partial(fused_forward_kernel, pool=pool,
                             n_heads=n_heads, d_head=d_head)

    logits, p_attn = pl.pallas_call(
        kern,
        out_shape=(jax.ShapeDtypeStruct((B, ncls), jnp.float32),
                   jax.ShapeDtypeStruct((B, n_heads * t, t), jnp.float32)),
        grid=(B,),
        in_specs=[
            pl.BlockSpec((1, l_out, kc), lambda b: (b, 0, 0)),      # x_patch
            pl.BlockSpec((kc, f0), lambda b: (0, 0)),               # conv_w
            pl.BlockSpec((1, f0), lambda b: (0, 0)),                # bn_scale
            pl.BlockSpec((1, f0), lambda b: (0, 0)),                # bn_shift
            pl.BlockSpec((f0, 3 * hd), lambda b: (0, 0)),           # w_qkv
            pl.BlockSpec((1, 3 * hd), lambda b: (0, 0)),            # b_qkv
            pl.BlockSpec((hd, lin), lambda b: (0, 0)),              # w1
            pl.BlockSpec((1, lin), lambda b: (0, 0)),               # b1
            pl.BlockSpec((lin, ncls), lambda b: (0, 0)),            # wf
            pl.BlockSpec((1, ncls), lambda b: (0, 0)),              # bf
        ],
        out_specs=(
            pl.BlockSpec((B, ncls), lambda b: (0, 0)),              # logits (written once)
            pl.BlockSpec((1, n_heads * t, t), lambda b: (b, 0, 0)),  # p_attn
        ),
        scratch_shapes=[pltpu.VMEM((B, lin), jnp.float32)],
        compiler_params=pltpu.CompilerParams(
            # The cross-batch 'normalize' readout accumulates over the batch
            # axis, so it must be sequential.
            dimension_semantics=("arbitrary",)),
    )(x_patch, params["conv_w"], params["bn_scale"], params["bn_shift"],
      params["w_qkv"], params["b_qkv"], params["w1"], params["b1"],
      params["wf"], params["bf"])

    return logits, p_attn                                   # genPAttn=True


# ---------------------------------------------------------------------------
# Deterministic parameter construction (already in fused / transposed layouts:
# nn.Linear (out,in) -> (in,out); Q/K/V of all heads stacked along the output
# dim as [Q_0..Q_{H-1} | K_0.. | V_0..]; conv weight flattened to (K*C_in, F0);
# BatchNorm folded into per-channel scale/shift).
# ---------------------------------------------------------------------------
def make_params(key, c_in, f0, ksize, n_heads, d_head, lin, ncls):
    ks = jax.random.split(key, 10)
    s = 0.1
    gamma = 1.0 + s * jax.random.normal(ks[1], (f0,))
    beta = s * jax.random.normal(ks[2], (f0,))
    r_mean = s * jax.random.normal(ks[3], (f0,))
    r_var = jax.random.uniform(ks[4], (f0,), minval=0.5, maxval=1.5)
    eps = 1e-5
    bn_scale = gamma / jnp.sqrt(r_var + eps)
    bn_shift = beta - r_mean * bn_scale
    hd = n_heads * d_head
    return dict(
        conv_w=(s * jax.random.normal(ks[0], (ksize * c_in, f0))).astype(jnp.float32),
        bn_scale=bn_scale.reshape(1, f0).astype(jnp.float32),
        bn_shift=bn_shift.reshape(1, f0).astype(jnp.float32),
        w_qkv=(s * jax.random.normal(ks[5], (f0, 3 * hd))).astype(jnp.float32),
        b_qkv=(s * jax.random.normal(ks[6], (1, 3 * hd))).astype(jnp.float32),
        w1=(s * jax.random.normal(ks[7], (hd, lin))).astype(jnp.float32),
        b1=jnp.full((1, lin), 0.01, jnp.float32),
        wf=(s * jax.random.normal(ks[8], (lin, ncls))).astype(jnp.float32),
        bf=jnp.zeros((1, ncls), jnp.float32),
    )


if __name__ == "__main__":
    B, C_IN, SEQ_LEN = 2, 4, 16          # numInputChannels=4, seq_len=16
    KSIZE, F0, PAD, POOL = 5, 32, 2, 2   # CNN_filters=[32], filtersize=[5]
    N_HEADS, D_HEAD = 2, 16              # num_multiheads=2, singlehead_size=16
    LIN, NCLS = 32, 2                    # linear_layer_size=32, numLabels=2

    key = jax.random.PRNGKey(0)
    k_x, k_p = jax.random.split(key)
    params = make_params(k_p, C_IN, F0, KSIZE, N_HEADS, D_HEAD, LIN, NCLS)
    x = jax.random.normal(k_x, (B, C_IN, SEQ_LEN), dtype=jnp.float32)

    fwd = jax.jit(functools.partial(attention_net_forward, pad=PAD, pool=POOL,
                                    n_heads=N_HEADS, d_head=D_HEAD))
    logits, p_attn = fwd(x, params)
    jax.block_until_ready((logits, p_attn))

    T = (SEQ_LEN + 2 * PAD - KSIZE + 1) // POOL
    assert logits.shape == (B, NCLS)
    # pAttn_concat: heads concatenated along dim=1 -> (B, H*T, T)
    assert p_attn.shape == (B, N_HEADS * T, T)
    assert bool(jnp.all(jnp.isfinite(logits)))
    assert bool(jnp.all(jnp.isfinite(p_attn)))
    print("KERNEL_OK")
</pallas_src>

<mosaic_0001>
module attributes {stable_mosaic.version = 11 : i64} {
  func.func @fused_forward_kernel(%arg0: i32, %arg1: memref<1x16x20xf32, #tpu.memory_space<vmem>>, %arg2: memref<20x32xf32, #tpu.memory_space<vmem>>, %arg3: memref<1x32xf32, #tpu.memory_space<vmem>>, %arg4: memref<1x32xf32, #tpu.memory_space<vmem>>, %arg5: memref<32x96xf32, #tpu.memory_space<vmem>>, %arg6: memref<1x96xf32, #tpu.memory_space<vmem>>, %arg7: memref<32x32xf32, #tpu.memory_space<vmem>>, %arg8: memref<1x32xf32, #tpu.memory_space<vmem>>, %arg9: memref<32x2xf32, #tpu.memory_space<vmem>>, %arg10: memref<1x2xf32, #tpu.memory_space<vmem>>, %arg11: memref<2x2xf32, #tpu.memory_space<vmem>>, %arg12: memref<1x16x8xf32, #tpu.memory_space<vmem>>, %arg13: memref<2x32xf32, #tpu.memory_space<vmem>>) attributes {dimension_semantics = [#tpu.dimension_semantics<arbitrary>], iteration_bounds = array<i64: 2>, scalar_prefetch = 0 : i64, scratch_operands = 1 : i64, tpu.core_type = #tpu.core_type<tc>, window_params = [{transform_indices = @transform_0, window_bounds = array<i64: 1, 16, 20>}, {pipeline_mode = #tpu.pipeline_mode<synchronous>, transform_indices = @transform_1, window_bounds = array<i64: 20, 32>}, {pipeline_mode = #tpu.pipeline_mode<synchronous>, transform_indices = @transform_2, window_bounds = array<i64: 1, 32>}, {pipeline_mode = #tpu.pipeline_mode<synchronous>, transform_indices = @transform_3, window_bounds = array<i64: 1, 32>}, {pipeline_mode = #tpu.pipeline_mode<synchronous>, transform_indices = @transform_4, window_bounds = array<i64: 32, 96>}, {pipeline_mode = #tpu.pipeline_mode<synchronous>, transform_indices = @transform_5, window_bounds = array<i64: 1, 96>}, {pipeline_mode = #tpu.pipeline_mode<synchronous>, transform_indices = @transform_6, window_bounds = array<i64: 32, 32>}, {pipeline_mode = #tpu.pipeline_mode<synchronous>, transform_indices = @transform_7, window_bounds = array<i64: 1, 32>}, {pipeline_mode = #tpu.pipeline_mode<synchronous>, transform_indices = @transform_8, window_bounds = array<i64: 32, 2>}, {pipeline_mode = #tpu.pipeline_mode<synchronous>, transform_indices = @transform_9, window_bounds = array<i64: 1, 2>}, {pipeline_mode = #tpu.pipeline_mode<synchronous>, transform_indices = @transform_10, window_bounds = array<i64: 2, 2>}, {transform_indices = @transform_11, window_bounds = array<i64: 1, 16, 8>}]} {
    %c0 = arith.constant 0 : index
    %c0_0 = arith.constant 0 : index
    %c0_1 = arith.constant 0 : index
    %0 = vector.load %arg1[%c0, %c0_0, %c0_1] : memref<1x16x20xf32, #tpu.memory_space<vmem>>, vector<1x16x20xf32>
    %1 = vector.shape_cast %0 : vector<1x16x20xf32> to vector<16x20xf32>
    %c0_2 = arith.constant 0 : index
    %c0_3 = arith.constant 0 : index
    %2 = vector.load %arg2[%c0_2, %c0_3] : memref<20x32xf32, #tpu.memory_space<vmem>>, vector<20x32xf32>
    %cst = arith.constant dense<0.000000e+00> : vector<16x32xf32>
    %3 = tpu.matmul %1, %2, %cst {dimension_numbers = #tpu.dot_dimension_numbers<[1], [0], [0], [1], [0, 0, 1, 1], [], []>} : vector<16x20xf32>, vector<20x32xf32>, vector<16x32xf32> -> vector<16x32xf32>
    %c0_4 = arith.constant 0 : index
    %c0_5 = arith.constant 0 : index
    %4 = vector.load %arg3[%c0_4, %c0_5] : memref<1x32xf32, #tpu.memory_space<vmem>>, vector<1x32xf32>
    %5 = vector.broadcast %4 : vector<1x32xf32> to vector<16x32xf32>
    %6 = arith.mulf %3, %5 : vector<16x32xf32>
    %c0_6 = arith.constant 0 : index
    %c0_7 = arith.constant 0 : index
    %7 = vector.load %arg4[%c0_6, %c0_7] : memref<1x32xf32, #tpu.memory_space<vmem>>, vector<1x32xf32>
    %8 = vector.broadcast %7 : vector<1x32xf32> to vector<16x32xf32>
    %9 = arith.addf %6, %8 : vector<16x32xf32>
    %cst_8 = arith.constant 0.000000e+00 : f32
    %10 = vector.broadcast %cst_8 : f32 to vector<16x32xf32>
    %11 = arith.maximumf %9, %10 : vector<16x32xf32>
    %12 = vector.shape_cast %11 : vector<16x32xf32> to vector<8x2x32xf32>
    %cst_9 = arith.constant dense<0xFF800000> : vector<8x32xf32>
    %13 = vector.multi_reduction <maximumf>, %12, %cst_9 [1] : vector<8x2x32xf32> to vector<8x32xf32>
    %c0_10 = arith.constant 0 : index
    %c0_11 = arith.constant 0 : index
    %14 = vector.load %arg5[%c0_10, %c0_11] : memref<32x96xf32, #tpu.memory_space<vmem>>, vector<32x96xf32>
    %cst_12 = arith.constant dense<0.000000e+00> : vector<8x96xf32>
    %15 = tpu.matmul %13, %14, %cst_12 {dimension_numbers = #tpu.dot_dimension_numbers<[1], [0], [0], [1], [0, 0, 1, 1], [], []>} : vector<8x32xf32>, vector<32x96xf32>, vector<8x96xf32> -> vector<8x96xf32>
    %c0_13 = arith.constant 0 : index
    %c0_14 = arith.constant 0 : index
    %16 = vector.load %arg6[%c0_13, %c0_14] : memref<1x96xf32, #tpu.memory_space<vmem>>, vector<1x96xf32>
    %17 = vector.broadcast %16 : vector<1x96xf32> to vector<8x96xf32>
    %18 = arith.addf %15, %17 : vector<8x96xf32>
    %cst_15 = arith.constant 0.000000e+00 : f32
    %19 = vector.broadcast %cst_15 : f32 to vector<8x32xf32>
    %20 = vector.extract_strided_slice %18 {offsets = [0, 0], sizes = [8, 16], strides = [1, 1]} : vector<8x96xf32> to vector<8x16xf32>
    %21 = vector.extract_strided_slice %18 {offsets = [0, 32], sizes = [8, 16], strides = [1, 1]} : vector<8x96xf32> to vector<8x16xf32>
    %22 = vector.extract_strided_slice %18 {offsets = [0, 64], sizes = [8, 16], strides = [1, 1]} : vector<8x96xf32> to vector<8x16xf32>
    %cst_16 = arith.constant dense<0.000000e+00> : vector<8x8xf32>
    %23 = tpu.matmul %20, %21, %cst_16 {dimension_numbers = #tpu.dot_dimension_numbers<[1], [1], [0], [0], [0, 0, 1, 0], [], []>} : vector<8x16xf32>, vector<8x16xf32>, vector<8x8xf32> -> vector<8x8xf32>
    %cst_17 = arith.constant 2.500000e-01 : f32
    %24 = vector.broadcast %cst_17 : f32 to vector<8x8xf32>
    %25 = arith.mulf %23, %24 : vector<8x8xf32>
    %cst_18 = arith.constant dense<0xFF800000> : vector<8xf32>
    %26 = vector.multi_reduction <maximumf>, %25, %cst_18 [1] : vector<8x8xf32> to vector<8xf32>
    %27 = vector.shape_cast %26 : vector<8xf32> to vector<8x1xf32>
    %28 = vector.broadcast %27 : vector<8x1xf32> to vector<8x8xf32>
    %29 = arith.subf %25, %28 : vector<8x8xf32>
    %30 = math.exp %29 : vector<8x8xf32>
    %cst_19 = arith.constant dense<0.000000e+00> : vector<8xf32>
    %31 = vector.multi_reduction <add>, %30, %cst_19 [1] : vector<8x8xf32> to vector<8xf32>
    %32 = vector.shape_cast %31 : vector<8xf32> to vector<8x1xf32>
    %33 = tpu.reciprocal %32 {approx = true} : vector<8x1xf32> -> vector<8x1xf32>
    %34 = vector.broadcast %33 : vector<8x1xf32> to vector<8x8xf32>
    %35 = arith.mulf %30, %34 : vector<8x8xf32>
    %c0_20 = arith.constant 0 : index
    %c0_21 = arith.constant 0 : index
    %c0_22 = arith.constant 0 : index
    %36 = vector.load %arg12[%c0_20, %c0_21, %c0_22] : memref<1x16x8xf32, #tpu.memory_space<vmem>>, vector<1x8x8xf32>
    %37 = vector.shape_cast %36 : vector<1x8x8xf32> to vector<8x8xf32>
    %38 = vector.shape_cast %35 : vector<8x8xf32> to vector<1x8x8xf32>
    tpu.vector_store %arg12[%c0_20, %c0_21, %c0_22], %38 {strides = array<i32>} : memref<1x16x8xf32, #tpu.memory_space<vmem>>, vector<1x8x8xf32>,
    %cst_23 = arith.constant dense<0.000000e+00> : vector<8x16xf32>
    %39 = tpu.matmul %35, %22, %cst_23 {dimension_numbers = #tpu.dot_dimension_numbers<[1], [0], [0], [1], [0, 0, 1, 1], [], []>} : vector<8x8xf32>, vector<8x16xf32>, vector<8x16xf32> -> vector<8x16xf32>
    %cst_24 = arith.constant 0.000000e+00 : f32
    %40 = vector.broadcast %cst_24 : f32 to vector<8x16xf32>
    %41 = arith.maximumf %39, %40 : vector<8x16xf32>
    %c0_25 = arith.constant 0 : index
    %c0_26 = arith.constant 0 : index
    %42 = vector.load %arg7[%c0_25, %c0_26] : memref<32x32xf32, #tpu.memory_space<vmem>>, vector<16x32xf32>
    %cst_27 = arith.constant dense<0.000000e+00> : vector<8x32xf32>
    %43 = tpu.matmul %41, %42, %cst_27 {dimension_numbers = #tpu.dot_dimension_numbers<[1], [0], [0], [1], [0, 0, 1, 1], [], []>} : vector<8x16xf32>, vector<16x32xf32>, vector<8x32xf32> -> vector<8x32xf32>
    %44 = arith.addf %19, %43 : vector<8x32xf32>
    %45 = vector.extract_strided_slice %18 {offsets = [0, 16], sizes = [8, 16], strides = [1, 1]} : vector<8x96xf32> to vector<8x16xf32>
    %46 = vector.extract_strided_slice %18 {offsets = [0, 48], sizes = [8, 16], strides = [1, 1]} : vector<8x96xf32> to vector<8x16xf32>
    %47 = vector.extract_strided_slice %18 {offsets = [0, 80], sizes = [8, 16], strides = [1, 1]} : vector<8x96xf32> to vector<8x16xf32>
    %cst_28 = arith.constant dense<0.000000e+00> : vector<8x8xf32>
    %48 = tpu.matmul %45, %46, %cst_28 {dimension_numbers = #tpu.dot_dimension_numbers<[1], [1], [0], [0], [0, 0, 1, 0], [], []>} : vector<8x16xf32>, vector<8x16xf32>, vector<8x8xf32> -> vector<8x8xf32>
    %cst_29 = arith.constant 2.500000e-01 : f32
    %49 = vector.broadcast %cst_29 : f32 to vector<8x8xf32>
    %50 = arith.mulf %48, %49 : vector<8x8xf32>
    %cst_30 = arith.constant dense<0xFF800000> : vector<8xf32>
    %51 = vector.multi_reduction <maximumf>, %50, %cst_30 [1] : vector<8x8xf32> to vector<8xf32>
    %52 = vector.shape_cast %51 : vector<8xf32> to vector<8x1xf32>
    %53 = vector.broadcast %52 : vector<8x1xf32> to vector<8x8xf32>
    %54 = arith.subf %50, %53 : vector<8x8xf32>
    %55 = math.exp %54 : vector<8x8xf32>
    %cst_31 = arith.constant dense<0.000000e+00> : vector<8xf32>
    %56 = vector.multi_reduction <add>, %55, %cst_31 [1] : vector<8x8xf32> to vector<8xf32>
    %57 = vector.shape_cast %56 : vector<8xf32> to vector<8x1xf32>
    %58 = tpu.reciprocal %57 {approx = true} : vector<8x1xf32> -> vector<8x1xf32>
    %59 = vector.broadcast %58 : vector<8x1xf32> to vector<8x8xf32>
    %60 = arith.mulf %55, %59 : vector<8x8xf32>
    %c0_32 = arith.constant 0 : index
    %c8 = arith.constant 8 : index
    %c0_33 = arith.constant 0 : index
    %61 = vector.load %arg12[%c0_32, %c8, %c0_33] : memref<1x16x8xf32, #tpu.memory_space<vmem>>, vector<1x8x8xf32>
    %62 = vector.shape_cast %61 : vector<1x8x8xf32> to vector<8x8xf32>
    %63 = vector.shape_cast %60 : vector<8x8xf32> to vector<1x8x8xf32>
    tpu.vector_store %arg12[%c0_32, %c8, %c0_33], %63 {strides = array<i32>} : memref<1x16x8xf32, #tpu.memory_space<vmem>>, vector<1x8x8xf32>,
    %cst_34 = arith.constant dense<0.000000e+00> : vector<8x16xf32>
    %64 = tpu.matmul %60, %47, %cst_34 {dimension_numbers = #tpu.dot_dimension_numbers<[1], [0], [0], [1], [0, 0, 1, 1], [], []>} : vector<8x8xf32>, vector<8x16xf32>, vector<8x16xf32> -> vector<8x16xf32>
    %cst_35 = arith.constant 0.000000e+00 : f32
    %65 = vector.broadcast %cst_35 : f32 to vector<8x16xf32>
    %66 = arith.maximumf %64, %65 : vector<8x16xf32>
    %c16 = arith.constant 16 : index
    %c0_36 = arith.constant 0 : index
    %67 = vector.load %arg7[%c16, %c0_36] : memref<32x32xf32, #tpu.memory_space<vmem>>, vector<16x32xf32>
    %cst_37 = arith.constant dense<0.000000e+00> : vector<8x32xf32>
    %68 = tpu.matmul %66, %67, %cst_37 {dimension_numbers = #tpu.dot_dimension_numbers<[1], [0], [0], [1], [0, 0, 1, 1], [], []>} : vector<8x16xf32>, vector<16x32xf32>, vector<8x32xf32> -> vector<8x32xf32>
    %69 = arith.addf %44, %68 : vector<8x32xf32>
    %c0_38 = arith.constant 0 : index
    %c0_39 = arith.constant 0 : index
    %70 = vector.load %arg8[%c0_38, %c0_39] : memref<1x32xf32, #tpu.memory_space<vmem>>, vector<1x32xf32>
    %71 = vector.broadcast %70 : vector<1x32xf32> to vector<8x32xf32>
    %72 = arith.addf %69, %71 : vector<8x32xf32>
    %cst_40 = arith.constant 0.000000e+00 : f32
    %73 = vector.broadcast %cst_40 : f32 to vector<8x32xf32>
    %74 = arith.maximumf %72, %73 : vector<8x32xf32>
    %cst_41 = arith.constant dense<0.000000e+00> : vector<32xf32>
    %75 = vector.multi_reduction <add>, %74, %cst_41 [0] : vector<8x32xf32> to vector<32xf32>
    %76 = vector.shape_cast %75 : vector<32xf32> to vector<1x32xf32>
    %77 = arith.index_cast %arg0 : i32 to index
    %c0_42 = arith.constant 0 : index
    %78 = vector.load %arg13[%77, %c0_42] : memref<2x32xf32, #tpu.memory_space<vmem>>, vector<1x32xf32>
    tpu.vector_store %arg13[%77, %c0_42], %76 {strides = array<i32>} : memref<2x32xf32, #tpu.memory_space<vmem>>, vector<1x32xf32>,
    %c1_i32 = arith.constant 1 : i32
    %79 = arith.cmpi eq, %arg0, %c1_i32 : i32
    %80 = arith.extui %79 : i1 to i32
    %c0_i32 = arith.constant 0 : i32
    %81 = arith.cmpi ne, %80, %c0_i32 : i32
    scf.if %81 {
      %c0_43 = arith.constant 0 : index
      %c0_44 = arith.constant 0 : index
      %82 = vector.load %arg13[%c0_43, %c0_44] : memref<2x32xf32, #tpu.memory_space<vmem>>, vector<2x32xf32>
      %83 = vector.shape_cast %82 : vector<2x32xf32> to vector<1x2x32xf32>
      %cst_45 = arith.constant dense<0.000000e+00> : vector<1xf32>
      %84 = vector.multi_reduction <add>, %83, %cst_45 [1, 2] : vector<1x2x32xf32> to vector<1xf32>
      %85 = vector.shape_cast %84 : vector<1xf32> to vector<1x1x1xf32>
      %86 = vector.extract %85[0, 0, 0] : f32 from vector<1x1x1xf32>
      %cst_46 = arith.constant 6.400000e+01 : f32
      %87 = arith.divf %86, %cst_46 : f32
      %88 = vector.broadcast %87 : f32 to vector<2x32xf32>
      %89 = arith.subf %82, %88 : vector<2x32xf32>
      %90 = arith.mulf %89, %89 : vector<2x32xf32>
      %91 = vector.shape_cast %90 : vector<2x32xf32> to vector<1x2x32xf32>
      %cst_47 = arith.constant dense<0.000000e+00> : vector<1xf32>
      %92 = vector.multi_reduction <add>, %91, %cst_47 [1, 2] : vector<1x2x32xf32> to vector<1xf32>
      %93 = vector.shape_cast %92 : vector<1xf32> to vector<1x1x1xf32>
      %94 = vector.extract %93[0, 0, 0] : f32 from vector<1x1x1xf32>
      %cst_48 = arith.constant 6.300000e+01 : f32
      %95 = arith.divf %94, %cst_48 : f32
      %96 = vector.broadcast %87 : f32 to vector<2x32xf32>
      %97 = arith.subf %82, %96 : vector<2x32xf32>
      %98 = math.rsqrt %95 : f32
      %99 = vector.broadcast %98 : f32 to vector<2x32xf32>
      %100 = arith.mulf %97, %99 : vector<2x32xf32>
      %c0_49 = arith.constant 0 : index
      %c0_50 = arith.constant 0 : index
      %101 = vector.load %arg9[%c0_49, %c0_50] : memref<32x2xf32, #tpu.memory_space<vmem>>, vector<32x2xf32>
      %cst_51 = arith.constant dense<0.000000e+00> : vector<2x2xf32>
      %102 = tpu.matmul %100, %101, %cst_51 {dimension_numbers = #tpu.dot_dimension_numbers<[1], [0], [0], [1], [0, 0, 1, 1], [], []>} : vector<2x32xf32>, vector<32x2xf32>, vector<2x2xf32> -> vector<2x2xf32>
      %c0_52 = arith.constant 0 : index
      %c0_53 = arith.constant 0 : index
      %103 = vector.load %arg10[%c0_52, %c0_53] : memref<1x2xf32, #tpu.memory_space<vmem>>, vector<1x2xf32>
      %104 = vector.broadcast %103 : vector<1x2xf32> to vector<2x2xf32>
      %105 = arith.addf %102, %104 : vector<2x2xf32>
      %c0_54 = arith.constant 0 : index
      %c0_55 = arith.constant 0 : index
      %106 = vector.load %arg11[%c0_54, %c0_55] : memref<2x2xf32, #tpu.memory_space<vmem>>, vector<2x2xf32>
      tpu.vector_store %arg11[%c0_54, %c0_55], %105 {strides = array<i32>} : memref<2x2xf32, #tpu.memory_space<vmem>>, vector<2x2xf32>,
    } else {
    }
    return
  }
  func.func @transform_0(%arg0: i32) -> (i32, i32, i32) {
    %c0_i32 = arith.constant 0 : i32
    %c0_i32_0 = arith.constant 0 : i32
    %c0_i32_1 = arith.constant 0 : i32
    return %arg0, %c0_i32, %c0_i32_0 : i32, i32, i32
  }
  func.func @transform_1(%arg0: i32) -> (i32, i32) {
    %c0_i32 = arith.constant 0 : i32
    %c0_i32_0 = arith.constant 0 : i32
    %c0_i32_1 = arith.constant 0 : i32
    return %c0_i32, %c0_i32_0 : i32, i32
  }
  func.func @transform_2(%arg0: i32) -> (i32, i32) {
    %c0_i32 = arith.constant 0 : i32
    %c0_i32_0 = arith.constant 0 : i32
    %c0_i32_1 = arith.constant 0 : i32
    return %c0_i32, %c0_i32_0 : i32, i32
  }
  func.func @transform_3(%arg0: i32) -> (i32, i32) {
    %c0_i32 = arith.constant 0 : i32
    %c0_i32_0 = arith.constant 0 : i32
    %c0_i32_1 = arith.constant 0 : i32
    return %c0_i32, %c0_i32_0 : i32, i32
  }
  func.func @transform_4(%arg0: i32) -> (i32, i32) {
    %c0_i32 = arith.constant 0 : i32
    %c0_i32_0 = arith.constant 0 : i32
    %c0_i32_1 = arith.constant 0 : i32
    return %c0_i32, %c0_i32_0 : i32, i32
  }
  func.func @transform_5(%arg0: i32) -> (i32, i32) {
    %c0_i32 = arith.constant 0 : i32
    %c0_i32_0 = arith.constant 0 : i32
    %c0_i32_1 = arith.constant 0 : i32
    return %c0_i32, %c0_i32_0 : i32, i32
  }
  func.func @transform_6(%arg0: i32) -> (i32, i32) {
    %c0_i32 = arith.constant 0 : i32
    %c0_i32_0 = arith.constant 0 : i32
    %c0_i32_1 = arith.constant 0 : i32
    return %c0_i32, %c0_i32_0 : i32, i32
  }
  func.func @transform_7(%arg0: i32) -> (i32, i32) {
    %c0_i32 = arith.constant 0 : i32
    %c0_i32_0 = arith.constant 0 : i32
    %c0_i32_1 = arith.constant 0 : i32
    return %c0_i32, %c0_i32_0 : i32, i32
  }
  func.func @transform_8(%arg0: i32) -> (i32, i32) {
    %c0_i32 = arith.constant 0 : i32
    %c0_i32_0 = arith.constant 0 : i32
    %c0_i32_1 = arith.constant 0 : i32
    return %c0_i32, %c0_i32_0 : i32, i32
  }
  func.func @transform_9(%arg0: i32) -> (i32, i32) {
    %c0_i32 = arith.constant 0 : i32
    %c0_i32_0 = arith.constant 0 : i32
    %c0_i32_1 = arith.constant 0 : i32
    return %c0_i32, %c0_i32_0 : i32, i32
  }
  func.func @transform_10(%arg0: i32) -> (i32, i32) {
    %c0_i32 = arith.constant 0 : i32
    %c0_i32_0 = arith.constant 0 : i32
    %c0_i32_1 = arith.constant 0 : i32
    return %c0_i32, %c0_i32_0 : i32, i32
  }
  func.func @transform_11(%arg0: i32) -> (i32, i32, i32) {
    %c0_i32 = arith.constant 0 : i32
    %c0_i32_0 = arith.constant 0 : i32
    %c0_i32_1 = arith.constant 0 : i32
    return %arg0, %c0_i32, %c0_i32_0 : i32, i32, i32
  }
}

</mosaic_0001>

<bundles_post_ra>
// kernel: attention_net_forward.1
= control target key start
LH: loop header
LB: loop body
LE: loop exit
PB: predicated region body
PF: predicated region fallthrough
CT: control target
= control target key end

     0   :  { %17 = vsyncpa [#allocation4], 0  ;;  %s1723_s17 = smov 0   ;;  %s1885_s0 = inlined_call_operand.vmem [shape: f32[2,16,20], index: 0, kind: input, shape index: {}]   ;;  %s1886_s1 = inlined_call_operand.vmem [shape: f32[20,32], index: 1, kind: input, shape index: {}]   ;;  %s1887_s2 = inlined_call_operand.vmem [shape: f32[1,32], index: 2, kind: input, shape index: {}]   ;;  %s1888_s3 = inlined_call_operand.vmem [shape: f32[1,32], index: 3, kind: input, shape index: {}]   ;;  %s1889_s4 = inlined_call_operand.vmem [shape: f32[32,96], index: 4, kind: input, shape index: {}]   ;;  %s1890_s5 = inlined_call_operand.vmem [shape: f32[1,96], index: 5, kind: input, shape index: {}]   ;;  %s1891_s6 = inlined_call_operand.vmem [shape: f32[32,32], index: 6, kind: input, shape index: {}]   ;;  %s1892_s7 = inlined_call_operand.vmem [shape: f32[1,32], index: 7, kind: input, shape index: {}]   ;;  %s1893_s8 = inlined_call_operand.vmem [shape: f32[32,2], index: 8, kind: input, shape index: {}]   ;;  %s1894_s9 = inlined_call_operand.vmem [shape: f32[1,2], index: 9, kind: input, shape index: {}]   ;;  %s1895_s10 = inlined_call_operand.hbm [shape: f32[2,2], index: 10, kind: output, shape index: {0}]   ;;  %s1896_s11 = inlined_call_operand.vmem [shape: f32[2,16,8], index: 11, kind: output, shape index: {1}]  }
   0x1 LB: > { %s1729_s18 = sadd.s32 4294967295, %s1648_s17   ;;  %p1419_p0 = scmp.ge.s32.totalorder %s1648_s17, 1  ;;  %s1648_s17 = sphi %s1723_s17, %s23_s17  }
   0x2   : > { %p336_p1 = scmp.lt.s32.totalorder %s1648_s17, 3 }
   0x4   : > { %p337_p2 = pnand %p1419_p0, %p336_p1 }
   0x5   : > { %v388_v0 = vld [vmem:[%s1886_s1] sm:$0xff] (!%p337_p2)  ;;  %v389_v1 = vld [vmem:[%s1886_s1 + $0x8] sm:$0xff] (!%p337_p2)  ;;  %p376_p3 = scmp.lt.s32.totalorder (!%p337_p2), %s1729_s18, 1  ;;  %v390_v3 = vld [vmem:[%s1886_s1 + $0x10] sm:$0xf] (!%p337_p2)  ;;  %vm398_vm0 = vcmask (!%p337_p2), 1043456   ;;  %v503_v16 = vlaneseq (!%p337_p2) }
   0x6   : > { %340 = sbr.rel (%p337_p2) target bundleno = 2304 (0x900), region = 60  ;;  %v1547_v2 = vpack.c.bf16 (!%p337_p2), %v389_v1, %v388_v0  ;;  %vm391_vm1 = vcmask (!%p337_p2), 162816   ;;  %v598_v6 = vld [vmem:[%s1889_s4] sm:$0xff] (!%p337_p2)  ;;  %v599_v7 = vld [vmem:[%s1889_s4 + $0x8] sm:$0xff] (!%p337_p2)  ;;  %v1650_v9 = vmov (!%p337_p2), 0.0|0.0   ;;  %v600_v10 = vld [vmem:[%s1889_s4 + $0x10] sm:$0xff] (!%p337_p2) }
   0x7   : > { %v1552_v8 = vpack.c.bf16 (!%p337_p2), %v599_v7, %v598_v6  ;;  %1551 = vmatprep.subr.bf16.mxu1 (!%p337_p2), %v1650_v9  ;;  %v601_v11 = vld [vmem:[%s1889_s4 + $0x18] sm:$0xff] (!%p337_p2)  ;;  %vm1651_vm2 = vmmov (!%p337_p2), 0   ;;  %v1652_v13 = vmov (!%p337_p2), 0.0   ;;  %v1653_v14 = vmov (!%p337_p2), 1983009808   ;;  %s1655_s30 = smov (!%p337_p2), 96  }
   0x8   : > { %1548 = vmatprep.subr.bf16.mxu0 (!%p337_p2), %v1547_v2  ;;  %v1555_v12 = vpack.c.bf16 (!%p337_p2), %v601_v11, %v600_v10  ;;  %1499 = vmatprep.mubr.msk.f32.mxu1 (!%p337_p2), %vm1651_vm2, %v1652_v13  ;;  %v501_v15 = vunpack.c.l.s4 (!%p337_p2), %v1653_v14  ;;  %v1427_v17 = vld [vmem:[%s1887_s2] ss:$0 sm:$0xff] (!%p337_p2)  ;;  %v504_v19 = vshrl.u32 (!%p337_p2), %v503_v16, 7  ;;  %vm541_vm3 = vcmask (!%p337_p2), 254976   ;;  %s1656_s12 = smov (!%p337_p2), 80   ;;  %s1657_s13 = smov (!%p337_p2), 48  }
   0x9   : > { %1550 = vmatpush3.bf16.msra.mxu0 (!%p337_p2), %v1547_v2  ;;  %1553 = vmatpush3.bf16.msra.mxu1 (!%p337_p2), %v1552_v8  ;;  %v1428_v21 = vld [vmem:[%s1888_s3] ss:$0 sm:$0xff] (!%p337_p2)  ;;  %vm617_vm4 = vcmask (!%p337_p2), 1041409   ;;  %vm619_vm5 = vcmask (!%p337_p2), 1042434   ;;  %vm621_vm6 = vcmask (!%p337_p2), 1043459   ;;  %vm623_vm7 = vcmask (!%p337_p2), 1044484  }
   0xa   : > { %1486 = vmatprep.subr.msk.mxu0 (!%p337_p2), %vm398_vm0, %v390_v3  ;;  %1554 = vmatprep.subr.bf16.mxu1 (!%p337_p2), %v1650_v9  ;;  %v502_v18 = vunpack.c.0.s8 (!%p337_p2), %v501_v15  ;;  %vm625_vm8 = vcmask (!%p337_p2), 1045509   ;;  %vm627_vm9 = vcmask (!%p337_p2), 1046534   ;;  %vm629_vm10 = vcmask (!%p337_p2), 1047559   ;;  %s1658_s14 = smov (!%p337_p2), 64   ;;  %p1441_p4 = scmp.ne.s32.totalorder (!%p337_p2), %s1729_s18, 1 }
   0xb   : > { %vm631_vm11 = vcmask (!%p337_p2), 261120   ;;  %vm707_vm12 = vcmask (!%p337_p2), 130048   ;;  %vm783_vm13 = vcmask (!%p337_p2), 64512   ;;  %vm1208_vm14 = vcmask (!%p337_p2), 253952  }
   0xc   : > { %v505_v26 = vsub.s32 (!%p337_p2), %v502_v18, %v504_v19 }
   0xd   : > { %s1744_s25 = scalar_select %p376_p3, %s1729_s18, 1  ;;  %1487 = vmatpush3.msk.msra.mxu0 %vm398_vm0, %v390_v3  ;;  %1556 = vmatpush3.bf16.msra.mxu1 %v1555_v12 }
   0xe   : > { %1502 = vmatprep.subr.mxu0 %v1652_v13  ;;  %1507 = vmatprep.subr.mxu1 %v1652_v13  ;;  %vm1660_vm15 = vmmov (!%p1441_p4), 0   ;;  %vm1333_vm0 = vcmask (!%p1441_p4), 9216  }
   0xf   : > { %s1448_s26 = sshll.u32 %s1744_s25, 4 }
  0x10   : > { %s380_s29 = scalar_lea.vmem %s1885_s0, %s1448_s26  ;;  %s385_s19 = scalar_lea.vmem %s1896_s11, %s1448_s26 }
  0x11   : > { %v386_v4 = vld [vmem:[%s380_s29] sm:$0xff]  ;;  %v387_v5 = vld [vmem:[%s380_s29 + $0x8] sm:$0xff]  ;;  %s1654_s29 = smov 112  }
  0x12   : > { %1488 = vmatprep.mubr.msk.f32.mxu0 %vm391_vm1, %v386_v4 }
  0x13   : > { %1489 = vmatmul.mubr.msk.f32.vlgmr.msra.gmra.mrb[0].mxu0 %vm391_vm1, %v387_v5 }
  0x14   : > { %1504 = vmatprep.mubr.msk.f32.mxu0 %vm1651_vm2, %v1652_v13 }
  0xe6   : > { %v1490_v20 = vpop.f32.mrb[0].mxu0 }
  0xe7   : > { %v485_v22 = vmul.f32 %v1490_v20, %v1427_v17  ;;  %v468_v23 = vpop.f32.mrb[1].mxu0 }
  0xe8   : > { %v484_v24 = vmul.f32 %v1427_v17, %v468_v23 }
  0xe9   : > { %v494_v25 = vadd.f32 %v1428_v21, %v485_v22 }
  0xea   : > { %v493_v27 = vadd.f32 %v1428_v21, %v484_v24 }
  0xeb   : > { %v496_v28 = vmax.f32 %v494_v25, 0.0 }
  0xec   : > { %v495_v29 = vmax.f32 %v493_v27, 0.0 }
  0xed   : > { %v516_v30 = vcombine.high %v496_v28, %v496_v28  ;;  %v523_v31 = vrot.slane %v496_v28, %v505_v26 }
  0xee   : > { %v499_v32 = vcombine.high %v495_v29, %v495_v29  ;;  %v506_v33 = vrot.slane %v495_v29, %v505_v26 }
  0xef   : > { %v530_v34 = vrot.slane %v516_v30, %v505_v26  ;;  %v531_v35 = vcombine.high %v523_v31, %v523_v31  ;;  %v570_v36 = vsel %vm541_vm3, %v523_v31, -inf }
  0xf0   : > { %v571_v37 = vrot.slane %v570_v36, 4  ;;  %v513_v38 = vrot.slane %v499_v32, %v505_v26  ;;  %v514_v39 = vcombine.high %v506_v33, %v506_v33  ;;  %v542_v40 = vsel %vm541_vm3, %v506_v33, -inf }
  0xf1   : > { %v532_v41 = vcombine.high %v530_v34, %v530_v34  ;;  %v577_v42 = vsel %vm541_vm3, %v531_v35, -inf  ;;  %v584_v43 = vsel %vm541_vm3, %v530_v34, -inf  ;;  %v543_v44 = vrot.slane %v542_v40, 4 }
  0xf2   : > { %v572_v45 = vmax.f32 %v570_v36, %v571_v37  ;;  %v578_v46 = vrot.slane %v577_v42, 4  ;;  %v585_v47 = vrot.slane %v584_v43, 4  ;;  %v515_v48 = vcombine.high %v513_v38, %v513_v38 }
  0xf3   : > { %v591_v49 = vsel %vm541_vm3, %v532_v41, -inf  ;;  %v544_v50 = vmax.f32 %v542_v40, %v543_v44  ;;  %v549_v51 = vsel %vm541_vm3, %v514_v39, -inf  ;;  %v556_v52 = vsel %vm541_vm3, %v513_v38, -inf  ;;  %v1429_v41 = vld [vmem:[%s1890_s5] ss:$0 sm:$0xff] }
  0xf4   : > { %v579_v53 = vmax.f32 %v577_v42, %v578_v46  ;;  %v586_v54 = vmax.f32 %v584_v43, %v585_v47  ;;  %v592_v55 = vrot.slane %v591_v49, 4  ;;  %v550_v57 = vrot.slane %v549_v51, 4 }
  0xf5   : > { %v545_v56 = vrot.slane %v544_v50, 2  ;;  %v557_v58 = vrot.slane %v556_v52, 4  ;;  %v563_v59 = vsel %vm541_vm3, %v515_v48, -inf  ;;  %v573_v60 = vrot.slane %v572_v45, 2 }
  0xf6   : > { %v580_v61 = vrot.slane %v579_v53, 2  ;;  %v564_v62 = vrot.slane %v563_v59, 4  ;;  %v551_v0 = vmax.f32 %v549_v51, %v550_v57  ;;  %v593_v2 = vmax.f32 %v591_v49, %v592_v55 }
  0xf7   : > { %v546_v63 = vmax.f32 %v544_v50, %v545_v56  ;;  %v558_v1 = vmax.f32 %v556_v52, %v557_v58  ;;  %v587_v3 = vrot.slane %v586_v54, 2  ;;  %v574_v8 = vmax.f32 %v572_v45, %v573_v60 }
  0xf8   : > { %v565_v4 = vmax.f32 %v563_v59, %v564_v62  ;;  %v552_v5 = vrot.slane %v551_v0, 2  ;;  %v594_v7 = vrot.slane %v593_v2, 2  ;;  %v581_v11 = vmax.f32 %v579_v53, %v580_v61 }
  0xf9   : > { %v559_v6 = vrot.slane %v558_v1, 2  ;;  %v547_v12 = vrot.slane %v546_v63, 1  ;;  %v588_v16 = vmax.f32 %v586_v54, %v587_v3  ;;  %v575_v21 = vrot.slane %v574_v8, 1 }
  0xfa   : > { %v566_v10 = vrot.slane %v565_v4, 2  ;;  %v553_v14 = vmax.f32 %v551_v0, %v552_v5  ;;  %v595_v20 = vmax.f32 %v593_v2, %v594_v7  ;;  %v582_v23 = vrot.slane %v581_v11, 1 }
  0xfb   : > { %v560_v15 = vmax.f32 %v558_v1, %v559_v6  ;;  %v548_v24 = vmax.f32 %v546_v63, %v547_v12  ;;  %v589_v28 = vrot.slane %v588_v16, 1  ;;  %v576_v31 = vmax.f32 %v574_v8, %v575_v21  ;;  %v874_v12 = vld [vmem:[%s1891_s6 + $0x8] sm:$0xff] }
  0xfc   : > { %v567_v17 = vmax.f32 %v565_v4, %v566_v10  ;;  %v554_v18 = vrot.slane %v553_v14, 1  ;;  %v596_v30 = vrot.slane %v595_v20, 1  ;;  %v583_v33 = vmax.f32 %v581_v11, %v582_v23  ;;  %v873_v11 = vld [vmem:[%s1891_s6] sm:$0xff] }
  0xfd   : > { %v561_v19 = vrot.slane %v560_v15, 1  ;;  %v590_v35 = vmax.f32 %v588_v16, %v589_v28 }
  0xfe   : > { %v568_v22 = vrot.slane %v567_v17, 1  ;;  %v555_v25 = vmax.f32 %v553_v14, %v554_v18  ;;  %v597_v37 = vmax.f32 %v595_v20, %v596_v30  ;;  %v1561_v14 = vpack.c.bf16 %v874_v12, %v873_v11 }
  0xff   : > { %v562_v26 = vmax.f32 %v560_v15, %v561_v19  ;;  %v1044_v15 = vld [vmem:[%s1891_s6 + $0x18] sm:$0xff] }
 0x100   : > { %v569_v27 = vmax.f32 %v567_v17, %v568_v22  ;;  %v618_v29 = vsel %vm617_vm4, %v555_v25, %v548_v24  ;;  %v1439_v25 = vld [vmem:[%s1892_s7] ss:$0 sm:$0xff] }
 0x101   : > { %v620_v32 = vsel %vm619_vm5, %v562_v26, %v618_v29 }
 0x102   : > { %v622_v34 = vsel %vm621_vm6, %v569_v27, %v620_v32 }
 0x103   : > { %v624_v36 = vsel %vm623_vm7, %v576_v31, %v622_v34 }
 0x104   : > { %v626_v38 = vsel %vm625_vm8, %v583_v33, %v624_v36 }
 0x105   : > { %v628_v39 = vsel %vm627_vm9, %v590_v35, %v626_v38 }
 0x106   : > { %v630_v40 = vsel %vm629_vm10, %v597_v37, %v628_v39 }
 0x107   : > { %1500 = vmatmul.mubr.msk.f32.vlgmr.msra.gmra.mrb[0].mxu1 %vm631_vm11, %v630_v40 }
 0x108   : > { %1509 = vmatprep.mubr.msk.f32.mxu1 %vm1651_vm2, %v1652_v13 }
 0x1da   : > { %v700_v42 = vpop.f32.mrb[0].mxu1 }
 0x1db   : > { %v701_v43 = vadd.f32 %v1429_v41, %v700_v42  ;;  %v1501_v44 = vpop.f32.mrb[1].mxu1 }
 0x1dd   : > { %875 = vrot.lane.b32.xlu1 %v701_v43, %s1654_s29  ;;  %705 = vrot.lane.b32.xlu0 %v701_v43, %s1655_s30  ;;  %s1450_s30 = scalar_lea.vmem [#allocation2], %s1648_s17 }
 0x1e1   : > { %877 = vrot.lane.b32.xlu0 %v701_v43, %s1656_s12 }
 0x24f   : > { %v706_v45 = vpop.permute.xlu0 %705  ;;  %v876_v47 = vpop.permute.xlu1 %875 }
 0x250   : > { %1503 = vmatpush3.xpose.msk.msra.mxu0 %vm707_vm12, %v706_v45 }
 0x251   : > { %1512 = vmatprep.subr.mxu0 %v1652_v13 }
 0x253   : > { %1505 = vmatmul.mubr.msk.f32.vlgmr.msra.gmra.mrb[2].mxu0 %vm707_vm12, %v701_v43  ;;  %v878_v46 = vpop.permute.xlu0 %877 }
 0x254   : > { %1513 = vmatpush3.xpose.msk.msra.mxu0 %vm707_vm12, %v878_v46  ;;  %1514 = vmatprep.mubr.msk.f32.mxu0 %vm1651_vm2, %v1652_v13 }
 0x255   : > { %1557 = vmatprep.subr.bf16.mxu0 %v1650_v9 }
 0x257   : > { %1515 = vmatmul.mubr.msk.f32.vlgmr.msra.gmra.mrb[4].mxu0 %vm707_vm12, %v876_v47 }
 0x258   : > { %1526 = vmatprep.mubr.msk.f32.mxu0 %vm1651_vm2, %v1652_v13 }
 0x326   : > { %v778_v48 = vpop.f32.mrb[2].mxu0 }
 0x327   : > { %v782_v49 = vmul.f32 0.25, %v778_v48  ;;  %v1506_v50 = vpop.f32.mrb[3].mxu0 }
 0x328   : > { %v1249_v50 = vld [vmem:[%s1893_s8] sm:$0xff] (!%p1441_p4) }
 0x329   : > { %v784_v51 = vsel %vm783_vm13, %v782_v49, -inf }
 0x32a   : > { %785 = vmax.xlane.f32.xlu1 %v784_v51  ;;  %v949_v52 = vpop.f32.mrb[4].mxu0  ;;  %v1250_v51 = vld [vmem:[%s1893_s8 + $0x8] sm:$0xff] (!%p1441_p4) }
 0x32b   : > { %v953_v53 = vmul.f32 0.25, %v949_v52  ;;  %v1516_v54 = vpop.f32.mrb[5].mxu0  ;;  %v1659_v52 = vmov (!%p1441_p4), 0.0|0.0  }
 0x32c   : > { %v1251_v54 = vld [vmem:[%s1893_s8 + $0x10] sm:$0xff] (!%p1441_p4) }
 0x32d   : > { %v954_v55 = vsel %vm783_vm13, %v953_v53, -inf }
 0x32e   : > { %955 = vmax.xlane.f32.xlu0 %v954_v55  ;;  %v1252_v55 = vld [vmem:[%s1893_s8 + $0x18] sm:$0xff] (!%p1441_p4) }
 0x3b7   : > { %v786_v56 = vpop.xlane.xlu1 %785 }
 0x3b8   : > { %v787_v57 = vsub.f32 %v782_v49, %v786_v56  ;;  %v1567_v56 = vpack.c.bf16 (!%p1441_p4), %v1252_v55, %v1251_v54 }
 0x3ba   : > { %v788_v58 = vmul.f32 1.442695, %v787_v57 }
 0x3bb   : > { %v956_v59 = vpop.xlane.xlu0 %955 }
 0x3bc   : > { %1602 = vpow2.f32 %v788_v58  ;;  %v957_v60 = vsub.f32 %v953_v53, %v956_v59  ;;  %v1564_v53 = vpack.c.bf16 (!%p1441_p4), %v1250_v51, %v1249_v50  ;;  %v1661_v59 = vmov (!%p1441_p4), 0.0  }
 0x3be   : > { %v958_v61 = vmul.f32 1.442695, %v957_v60 }
 0x3c0   : > { %1604 = vpow2.f32 %v958_v61 }
 0x3c6   : > { %v1603_v62 = vpop.eup %1602 }
 0x3c7   : > { %v790_v63 = vsel %vm783_vm13, %v1603_v62, 0.0 }
 0x3c8   : > { %791 = vadd.xlane.f32.xlu0 %v790_v63 }
 0x3ca   : > { %v1605_v0 = vpop.eup %1604 }
 0x3cb   : > { %v960_v1 = vsel %vm783_vm13, %v1605_v0, 0.0 }
 0x3cc   : > { %961 = vadd.xlane.f32.xlu1 %v960_v1 }
 0x3dd   : > { %966 = vrot.lane.b32.xlu1 %v701_v43, %s1657_s13 }
 0x3de   : > { %796 = vrot.lane.b32.xlu0 %v701_v43, %s1658_s14 }
 0x455   : > { %v792_v2 = vpop.xlane.xlu0 %791 }
 0x456   : > { %1606 = vrcp.f32 %v792_v2 }
 0x459   : > { %v962_v3 = vpop.xlane.xlu1 %961  ;;  %v797_v4 = vpop.permute.xlu0 %796 }
 0x45a   : > { %1608 = vrcp.f32 %v962_v3  ;;  %1508 = vmatpush3.msra.mxu1 %v797_v4 }
 0x45b   : > { %1517 = vmatprep.subr.mxu1 %v1652_v13 }
 0x45d   : > { %v967_v7 = vpop.permute.xlu1 %966 }
 0x460   : > { %v1607_v5 = vpop.eup %1606 }
 0x461   : > { %v794_v6 = vmul.f32 %v1607_v5, %v1603_v62  ;;  %v1442_v5 = vld [vmem:[%s1894_s9] ss:$0 sm:$0xff] (!%p1441_p4) }
 0x463   : > { %795 = vst.msk [vmem:[%s385_s19] sm:$0xff] %vm783_vm13, %v794_v6  ;;  %1510 = vmatmul.mubr.msk.f32.vlgmr.msra.gmra.mrb[2].mxu1 %vm783_vm13, %v794_v6 }
 0x464   : > { %v1609_v8 = vpop.eup %1608  ;;  %1518 = vmatpush3.msra.mxu1 %v967_v7  ;;  %1519 = vmatprep.mubr.msk.f32.mxu1 %vm1651_vm2, %v1652_v13 }
 0x465   : > { %v964_v10 = vmul.f32 %v1609_v8, %v1605_v0  ;;  %1560 = vmatprep.subr.bf16.mxu1 %v1650_v9  ;;  %v1043_v9 = vld [vmem:[%s1891_s6 + $0x10] sm:$0xff] }
 0x466   : > { %v1558_v16 = vpack.c.bf16 %v1044_v15, %v1043_v9 }
 0x467   : > { %965 = vst.msk [vmem:[%s385_s19 + $0x8] sm:$0xff] %vm783_vm13, %v964_v10  ;;  %1520 = vmatmul.mubr.msk.f32.vlgmr.msra.gmra.mrb[4].mxu1 %vm783_vm13, %v964_v10 }
 0x468   : > { %1533 = vmatprep.mubr.msk.f32.mxu1 %vm1651_vm2, %v1652_v13  ;;  %1562 = vmatpush3.bf16.msra.mxu1 %v1561_v14 }
 0x469   : > { %1559 = vmatpush3.bf16.msra.mxu0 %v1558_v16 }
 0x46a   : > { %1563 = vmatprep.subr.bf16.mxu0 (!%p1441_p4), %v1659_v52 }
 0x536   : > { %v868_v13 = vpop.f32.mrb[2].mxu1 }
 0x537   : > { %v872_v17 = vmax.f32 %v868_v13, 0.0  ;;  %v1511_v18 = vpop.f32.mrb[3].mxu1 }
 0x539   : > { %1534 = vmatmul.mubr.msk.f32.vlgmr.msra.gmra.mrb[6].mxu1 %vm707_vm12, %v872_v17 }
 0x53a   : > { %v1038_v19 = vpop.f32.mrb[4].mxu1 }
 0x53b   : > { %v1042_v20 = vmax.f32 %v1038_v19, 0.0  ;;  %v1521_v21 = vpop.f32.mrb[5].mxu1 }
 0x53d   : > { %1527 = vmatmul.mubr.msk.f32.vlgmr.msra.gmra.mrb[6].mxu0 %vm707_vm12, %v1042_v20 }
 0x53e   : > { %1565 = vmatpush3.bf16.msra.mxu0 (!%p1441_p4), %v1564_v53  ;;  %1544 = vmatprep.mubr.msk.f32.mxu0 (!%p1441_p4), %vm1660_vm15, %v1661_v59 }
 0x53f   : > { %1566 = vmatprep.subr.bf16.mxu0 (!%p1441_p4), %v1659_v52 }
 0x542   : > { %1568 = vmatpush3.bf16.msra.mxu0 (!%p1441_p4), %v1567_v56 }
 0x60c   : > { %v1187_v22 = vpop.f32.mrb[6].mxu1 }
 0x60d   : > { %v1535_v23 = vpop.f32.mrb[7].mxu1 }
 0x610   : > { %v1114_v24 = vpop.f32.mrb[6].mxu0 }
 0x611   : > { %v1188_v26 = vadd.f32 %v1187_v22, %v1114_v24  ;;  %v1528_v27 = vpop.f32.mrb[7].mxu0 }
 0x613   : > { %v1198_v28 = vadd.f32 %v1439_v25, %v1188_v26 }
 0x615   : > { %v1199_v29 = vmax.f32 %v1198_v28, 0.0 }
 0x617   : > { %v1200_v30 = vsel %vm631_vm11, %v1199_v29, 0.0 }
 0x618   : > { %v1201_v31 = vrot.slane %v1200_v30, 4 }
 0x61a   : > { %v1202_v32 = vadd.f32 %v1201_v31, %v1200_v30 }
 0x61c   : > { %v1203_v33 = vrot.slane %v1202_v32, 2 }
 0x61e   : > { %v1204_v34 = vadd.f32 %v1203_v33, %v1202_v32  ;;  %1213 = sbr.rel (%p1441_p4) target bundleno = 2279 (0x8e7), region = 64 }
 0x620   : > { %v1205_v35 = vrot.slane %v1204_v34, 1 }
 0x622   : > { %v1206_v36 = vadd.f32 %v1205_v35, %v1204_v34 }
 0x624   : > { %1452 = vst.msk [vmem:[%s1450_s30 - $0x1] sm:$0x1] %vm1208_vm14, %v1206_v36 }
 0x62b   : > { %v1214_v37 = vld [vmem:[#allocation2] sm:$0x3] }
 0x62c   : > { %v1215_v38 = vsel %vm541_vm3, %v1214_v37, 0.0 }
 0x62d   : > { %1216 = vadd.xlane.f32.xlu0 %v1215_v38 }
 0x6ba   : > { %v1217_v39 = vpop.xlane.xlu0 %1216 }
 0x6bb   : > { %v1218_v40 = vrot.slane %v1217_v39, 4 }
 0x6bd   : > { %v1219_v41 = vadd.f32 %v1218_v40, %v1217_v39 }
 0x6bf   : > { %v1220_v42 = vrot.slane %v1219_v41, 2 }
 0x6c1   : > { %v1221_v43 = vadd.f32 %v1220_v42, %v1219_v41 }
 0x6c3   : > { %v1222_v44 = vrot.slane %v1221_v43, 1 }
 0x6c5   : > { %v1223_v45 = vadd.f32 %v1222_v44, %v1221_v43 }
 0x6c7   : > { %1569 = vpush %v1223_v45 }
 0x6f8   : > { %s1570_s12 = spop %1569 }
 0x6f9   : > { %s1227_s13 = smul.f32 0.015625, %s1570_s12 }
 0x6fb   : > { %v1228_v46 = vstv %s1227_s13 }
 0x6fc   : > { %v1229_v47 = vsub.f32 %v1214_v37, %v1228_v46 }
 0x6fe   : > { %v1230_v48 = vmul.f32 %v1229_v47, %v1229_v47 }
 0x700   : > { %v1231_v49 = vsel %vm541_vm3, %v1230_v48, 0.0 }
 0x701   : > { %1232 = vadd.xlane.f32.xlu0 %v1231_v49 }
 0x78e   : > { %v1233_v57 = vpop.xlane.xlu0 %1232 }
 0x78f   : > { %v1234_v58 = vrot.slane %v1233_v57, 4 }
 0x791   : > { %v1235_v60 = vadd.f32 %v1234_v58, %v1233_v57 }
 0x793   : > { %v1236_v61 = vrot.slane %v1235_v60, 2 }
 0x795   : > { %v1237_v62 = vadd.f32 %v1236_v61, %v1235_v60 }
 0x797   : > { %v1238_v63 = vrot.slane %v1237_v62, 1 }
 0x799   : > { %v1239_v0 = vadd.f32 %v1238_v63, %v1237_v62 }
 0x79b   : > { %1571 = vpush %v1239_v0 }
 0x7cc   : > { %s1572_s22 = spop %1571 }
 0x7cd   : > { %s1243_s23 = smul.f32 0.015873017, %s1572_s22 }
 0x7cf   : > { %v1244_v1 = vstv %s1243_s23 }
 0x7d0   : > { %1610 = vrsqrt.f32 %v1244_v1 }
 0x7da   : > { %v1611_v2 = vpop.eup %1610 }
 0x7db   : > { %1573 = vpush %v1611_v2 }
 0x80c   : > { %s1574_s24 = spop %1573 }
 0x80d   : > { %v1247_v3 = vstv %s1574_s24 }
 0x80e   : > { %v1248_v4 = vmul.f32 %v1247_v3, %v1229_v47 }
 0x810   : > { %1545 = vmatmul.mubr.msk.f32.vlgmr.msra.gmra.mrb[0].mxu0 %vm631_vm11, %v1248_v4 }
 0x8e3   : > { %v1329_v6 = vpop.f32.mrb[0].mxu0 }
 0x8e4   : > { %v1330_v7 = vadd.f32 %v1442_v5, %v1329_v6  ;;  %v1546_v8 = vpop.f32.mrb[1].mxu0 }
 0x8e6   : > { %1334 = vst.msk [vmem:[#allocation3] sm:$0x3] %vm1333_vm0, %v1330_v7 }
 0x8e7 PF: > { %p1579_p5 = scmp.eq.s32.totalorder %s1729_s18, 1  ;;  %s1662_s29 = smov [#allocation3]  }
 0x8e8   : > { %s1347_s30 = sshll.u32 %s1662_s29, 4  ;;  %s1348_s30 = int_to_ptr.vmem [resolvable:$true] %s1347_s30 }
 0x8e9   : > { %s1612_s12 = scalar_lea.vmem %s1348_s30, 32  ;;  %p1619_p9 = scmp.lt.s32.totalorder %s1348_s30, %s1348_s30 }
 0x8ea   : > { %p1613_p6 = scmp.ne.s32.totalorder %s1348_s30, %s1612_s12  ;;  %p1620_p10 = scmp.lt.s32.totalorder %s1612_s12, %s1612_s12 }
 0x8ec   : > { %p1614_p7 = pnand %p1613_p6, %p1579_p5  ;;  %p1621_p11 = por %p1620_p10, %p1619_p9 }
 0x8ee   : > { %p1615_p8 = pneg %p1614_p7 }
 0x8f0   : > { %p1622_p12 = pnand %p1621_p11, %p1615_p8 }
 0x8f2   : > { %1625 = shalt.err (!%p1622_p12)
}
 0x8f3   : > { %s1626_s15 = scalar_lea.hbm %s1895_s10, 32 }
 0x8f4   : > { %p1627_p13 = scmp.ne.s32.totalorder %s1895_s10, %s1626_s15  ;;  %p1632_p2 = scmp.lt.u32.totalorder %s1626_s15, %s1895_s10 }
 0x8f6   : > { %p1628_p0 = pnand %p1627_p13, %p1579_p5 }
 0x8f8   : > { %p1629_p1 = pneg %p1628_p0 }
 0x8fa   : > { %p1634_p3 = pnand %p1632_p2, %p1629_p1 }
 0x8fc   : > { %1637 = shalt.err (!%p1634_p3)
}
 0x8fd   : > { %1576 = dma.vmem_to_hbm [thread:$0]  (%p1579_p5), %s1348_s30, 32, %s1895_s10, [#allocation4]  }
 0x8fe   : > { %1643 = dma.done.wait (%p1579_p5), [#allocation4], 32  }
 0x8ff   : > { %1645 = vsyncadd (%p1579_p5), [#allocation4], 4294967264 }
 0x900 PF: > { %s23_s17 = sadd.s32 1, %s1648_s17  }
 0x901   : > { %p20_p4 = scmp.ge.s32.totalorder %s23_s17, 4  }
 0x903   :  { %22 = sbr.rel (!%p20_p4) target bundleno = 1 (0x1), region = 104 }
 0x90a   :  { %1371 = vsyncpa [#allocation4], 1 }
 0x90b   :  { %1373 = vsyncpa [#allocation4 + $0x1], 1 }

</bundles_post_ra>
